<compile_context>
chip_gen: v5e
topology: v5e:2x2
jax: 0.10.0
libtpu: 0.0.40
codegen_flags: <defaults>
</compile_context>

<pallas_src>
import functools
import math

import jax
import jax.numpy as jnp
from jax.experimental import pallas as pl
from jax.experimental.pallas import tpu as pltpu

IGNORE_INDEX = 255


def _col_tile(n, cap, mult=128):
    """Largest tile <= cap that divides n and is a multiple of `mult`; else n."""
    if n <= cap:
        return n
    start = cap - (cap % mult)
    for t in range(start, 0, -mult):
        if n % t == 0:
            return t
    return n


# ----------------------------------------------------------------------------
# Kernel 1: fused  patch-embed -> (folded) LoRA-qkv q-third -> linear head
# Everything is feature-major: tokens sit on the lane axis, features/classes
# on sublanes, so the only HBM write is a lane-dense (8, M) logits slab.
# All intermediates stay in VMEM.
# ----------------------------------------------------------------------------
def _fused_fwd_kernel(x_ref, wp_ref, bp_ref, wq_ref, bq_ref, wh_ref, bh_ref,
                      o_ref):
    # patch embed: tokens^T = Wp^T @ x^T + bp        (dim, tm), f32 accumulate
    tokens = (jnp.dot(wp_ref[...], x_ref[...],
                      preferred_element_type=jnp.float32) + bp_ref[...])

    # _LoRA_qkv.forward, q third, LoRA delta pre-folded into the weight
    # (W_q' = W_qkv[:, :D] + A_q @ B_q) -- identical to qkv[...,:D] += Bq(Aq(x)).
    q = (jnp.dot(wq_ref[...], tokens.astype(jnp.bfloat16),
                 preferred_element_type=jnp.float32) + bq_ref[...])

    # linear decode head: classes on sublanes (padded to 8), tokens on lanes.
    o_ref[...] = (jnp.dot(wh_ref[...], q.astype(jnp.bfloat16),
                          preferred_element_type=jnp.float32)
                  + bh_ref[...]).astype(o_ref.dtype)


def prepare_params(params, num_classes):
    """One-time host-side weight packing (hoisted out of the hot forward)."""
    dim = params["w_patch"].shape[1]
    nc_pad = max(8, ((num_classes + 7) // 8) * 8)

    # Fold the LoRA deltas into the frozen qkv weight (forward-only):
    #   W_qkv'[:, :D]  += A_q @ B_q ;  W_qkv'[:, -D:] += A_v @ B_v
    w_q_eff = params["w_qkv"][:, :dim] + params["a_q"] @ params["b_q"]
    # TODO(synk): the folded k/v thirds (incl. A_v @ B_v) feed the DINOv2
    # attention blocks, which this stand-in backbone does not model.
    _w_v_eff = params["w_qkv"][:, 2 * dim:] + params["a_v"] @ params["b_v"]
    del _w_v_eff

    return {
        "wp_t": params["w_patch"].T.astype(jnp.bfloat16),            # (dim, Kin)
        "bp_c": params["b_patch"].reshape(dim, 1),                   # (dim, 1)
        "wq_t": w_q_eff.T.astype(jnp.bfloat16),                      # (dim, dim)
        "bq_c": params["b_qkv"][:, :dim].reshape(dim, 1),            # (dim, 1)
        "wh_t": jnp.pad(params["w_head"].T,
                        ((0, nc_pad - num_classes), (0, 0))
                        ).astype(jnp.bfloat16),                      # (nc_pad, dim)
        "bh_c": jnp.pad(params["b_head"].reshape(num_classes, 1),
                        ((0, nc_pad - num_classes), (0, 0))),        # (nc_pad, 1)
    }


def fused_backbone_head(x_t, prep, tm=None):
    """x_t: (Kin, M) bf16 feature-major patch slab -> (nc_pad, M) f32 logits^T."""
    Kin, M = x_t.shape
    dim = prep["wp_t"].shape[0]
    nc_pad = prep["wh_t"].shape[0]
    if tm is None:
        tm = _col_tile(M, 2048, 128)
    assert M % tm == 0

    # grid-invariant weights/biases: fetched once, single-buffered.
    def wspec(shape):
        return pl.BlockSpec(shape, lambda i: (0, 0),
                            pipeline_mode=pl.Buffered(buffer_count=1))

    # TODO(synk): at real DINOv2 dims, K-tile the contraction with a trailing
    # "arbitrary" grid axis + f32 VMEM accumulator instead of resident weights.
    return pl.pallas_call(
        _fused_fwd_kernel,
        out_shape=jax.ShapeDtypeStruct((nc_pad, M), jnp.float32),
        grid_spec=pltpu.PrefetchScalarGridSpec(
            num_scalar_prefetch=0,
            grid=(M // tm,),
            in_specs=[pl.BlockSpec((Kin, tm), lambda i: (0, i)),
                      wspec((dim, Kin)),
                      wspec((dim, 1)),
                      wspec((dim, dim)),
                      wspec((dim, 1)),
                      wspec((nc_pad, dim)),
                      wspec((nc_pad, 1))],
            out_specs=pl.BlockSpec((nc_pad, tm), lambda i: (0, i))),
        compiler_params=pltpu.CompilerParams(
            dimension_semantics=("parallel",),
            vmem_limit_bytes=32 * 1024 * 1024),
    )(x_t, prep["wp_t"], prep["bp_c"], prep["wq_t"], prep["bq_c"],
      prep["wh_t"], prep["bh_c"])


# ----------------------------------------------------------------------------
# Kernel 2: CrossEntropyLoss.forward (ignore_index=255, mean over valid)
# Logits arrive as a (C, P) slab (classes on sublanes, pixels on lanes).
# Per grid step: elementwise accumulate into (1, tp) VMEM scratch; the single
# cross-lane reduction to (1,1) happens only in the last-step epilogue.
# ----------------------------------------------------------------------------
def _ce_loss_kernel(logits_ref, tgt_ref, sum_ref, cnt_ref,
                    sum_acc, cnt_acc, *, ignore_index):
    @pl.when(pl.program_id(0) == 0)
    def _():
        sum_acc[...] = jnp.zeros_like(sum_acc)
        cnt_acc[...] = jnp.zeros_like(cnt_acc)

    logits = logits_ref[...].astype(jnp.float32)                 # (C, tp)
    tgt = tgt_ref[...]                                           # (1, tp) int32
    m = jnp.max(logits, axis=0, keepdims=True)                   # (1, tp)
    lse = m + jnp.log(jnp.sum(jnp.exp(logits - m), axis=0, keepdims=True))
    cls_ids = jax.lax.broadcasted_iota(jnp.int32, logits.shape, 0)
    tgt_logit = jnp.sum(jnp.where(cls_ids == tgt, logits, 0.0),
                        axis=0, keepdims=True)                   # (1, tp)
    valid = (tgt != ignore_index).astype(jnp.float32)            # (1, tp)

    # lane-wise accumulation only; no per-step cross-lane reduce / (1,1) store
    sum_acc[...] += (lse - tgt_logit) * valid
    cnt_acc[...] += valid

    @pl.when(pl.program_id(0) == pl.num_programs(0) - 1)
    def _():
        sum_ref[...] = jnp.sum(sum_acc[...]).reshape(1, 1)
        cnt_ref[...] = jnp.sum(cnt_acc[...]).reshape(1, 1)


def cross_entropy_loss(pred, target, ignore_index=IGNORE_INDEX, tp=None):
    """pred: (N, num_class, H, W) float; target: (N, H, W) int -> scalar mean."""
    N, C, H, W = pred.shape
    P = N * H * W
    logits_t = jnp.transpose(pred, (1, 0, 2, 3)).reshape(C, P)   # classes x pixels
    tgt = target.reshape(1, P).astype(jnp.int32)
    if tp is None:
        tp = _col_tile(P, 65536, 128)     # large tiles: grid-overhead -> BW bound
    assert P % tp == 0

    loss_sum, valid_cnt = pl.pallas_call(
        functools.partial(_ce_loss_kernel, ignore_index=ignore_index),
        out_shape=(jax.ShapeDtypeStruct((1, 1), jnp.float32),
                   jax.ShapeDtypeStruct((1, 1), jnp.float32)),
        grid_spec=pltpu.PrefetchScalarGridSpec(
            num_scalar_prefetch=0,
            grid=(P // tp,),
            in_specs=[pl.BlockSpec((C, tp), lambda i: (0, i)),
                      pl.BlockSpec((1, tp), lambda i: (0, i))],
            out_specs=[pl.BlockSpec((1, 1), lambda i: (0, 0)),
                       pl.BlockSpec((1, 1), lambda i: (0, 0))],
            scratch_shapes=[pltpu.VMEM((1, tp), jnp.float32),
                            pltpu.VMEM((1, tp), jnp.float32)]),
        compiler_params=pltpu.CompilerParams(
            dimension_semantics=("arbitrary",)),
    )(logits_t, tgt)
    # TODO(synk): PyTorch returns NaN if every pixel is ignore_index; we return 0.
    return loss_sum[0, 0] / jnp.maximum(valid_cnt[0, 0], 1.0)


# ----------------------------------------------------------------------------
# PDZSeg forward (synthetic, small) — hot path is one fused Pallas kernel + CE
# ----------------------------------------------------------------------------
def init_params(key, in_ch=3, patch=4, dim=32, r=4, num_classes=2):
    ks = jax.random.split(key, 8)
    kin = in_ch * patch * patch
    p = {}
    p["w_patch"] = jax.random.normal(ks[0], (kin, dim), jnp.float32) / math.sqrt(kin)
    p["b_patch"] = jnp.zeros((1, dim), jnp.float32)
    p["w_qkv"] = jax.random.normal(ks[1], (dim, 3 * dim), jnp.float32) / math.sqrt(dim)
    p["b_qkv"] = jax.random.normal(ks[2], (1, 3 * dim), jnp.float32) * 0.02
    bound = 1.0 / math.sqrt(dim)  # kaiming_uniform_(a=sqrt(5)) on fan_in=dim
    p["a_q"] = jax.random.uniform(ks[3], (dim, r), jnp.float32, -bound, bound)
    p["b_q"] = jnp.zeros((r, dim), jnp.float32)   # reset_parameters: zeros_
    p["a_v"] = jax.random.uniform(ks[4], (dim, r), jnp.float32, -bound, bound)
    p["b_v"] = jnp.zeros((r, dim), jnp.float32)   # reset_parameters: zeros_
    p["w_head"] = jax.random.normal(ks[5], (dim, num_classes), jnp.float32) / math.sqrt(dim)
    p["b_head"] = jnp.zeros((1, num_classes), jnp.float32)
    return p


def pdz_seg_forward(prep, pixel_values, seg_gt, patch=4, num_classes=2):
    """pixel_values: (B, 3, H, W) NCHW ; seg_gt: (B, H, W) int -> (loss, logits NCHW)."""
    B, C_in, H, W = pixel_values.shape
    Hp, Wp = H // patch, W // patch
    M = B * Hp * Wp

    # TODO(synk): the full DINOv2 ViT backbone (torch.hub) is replaced by a
    # single synthetic patch-embed + (folded) LoRA-qkv stage; attention blocks
    # are not modeled.
    # Feature-major patchify: (Kin, M) with tokens on the lane axis, so the
    # fused kernel's output is lane-dense with only an 8-row class pad.
    x_t = jnp.transpose(
        pixel_values.reshape(B, C_in, Hp, patch, Wp, patch),
        (1, 3, 5, 0, 2, 4)).reshape(C_in * patch * patch, M).astype(jnp.bfloat16)

    logits_t = fused_backbone_head(x_t, prep)                     # (nc_pad, M)
    patch_logits = logits_t[:num_classes].reshape(num_classes, B, Hp, Wp)
    patch_logits = jnp.transpose(patch_logits, (1, 0, 2, 3))      # NCHW

    # TODO(synk): SegformerHeadv2 is unavailable; a linear head + bilinear
    # upsample stand in.  jax.image.resize(bilinear) does not match PyTorch
    # F.interpolate's pixel-center convention bit-for-bit.
    pred_seg = jax.image.resize(patch_logits, (B, num_classes, H, W),
                                method="bilinear")

    loss = cross_entropy_loss(pred_seg, seg_gt, ignore_index=IGNORE_INDEX)
    return loss, pred_seg


if __name__ == "__main__":
    key = jax.random.PRNGKey(0)
    k_par, k_img, k_gt = jax.random.split(key, 3)

    B, C_in, H, W = 2, 3, 16, 16
    num_classes, dim, patch, r = 2, 32, 4, 4

    params = init_params(k_par, in_ch=C_in, patch=patch, dim=dim, r=r,
                         num_classes=num_classes)
    prep = prepare_params(params, num_classes)       # one-time weight packing

    pixel_values = jax.random.normal(k_img, (B, C_in, H, W), jnp.float32)
    seg_gt = jax.random.randint(k_gt, (B, H, W), 0, num_classes).astype(jnp.int32)
    # mark a deterministic region as ignore_index (exercises CE masking)
    seg_gt = seg_gt.at[:, :2, :].set(IGNORE_INDEX)

    loss, logits = pdz_seg_forward(prep, pixel_values, seg_gt,
                                   patch=patch, num_classes=num_classes)
    jax.block_until_ready((loss, logits))

    # --- check 1: fused kernel vs plain-JAX reference (same dtype path) ---
    Hp, Wp = H // patch, W // patch
    M = B * Hp * Wp
    x_t = jnp.transpose(pixel_values.reshape(B, C_in, Hp, patch, Wp, patch),
                        (1, 3, 5, 0, 2, 4)).reshape(C_in * patch * patch, M)
    x_t = x_t.astype(jnp.bfloat16)
    tok = jnp.dot(prep["wp_t"], x_t, preferred_element_type=jnp.float32) + prep["bp_c"]
    qf = jnp.dot(prep["wq_t"], tok.astype(jnp.bfloat16),
                 preferred_element_type=jnp.float32) + prep["bq_c"]
    ref_logits_t = jnp.dot(prep["wh_t"], qf.astype(jnp.bfloat16),
                           preferred_element_type=jnp.float32) + prep["bh_c"]
    kern_logits_t = fused_backbone_head(x_t, prep)
    assert jnp.allclose(kern_logits_t, ref_logits_t, rtol=1e-3, atol=1e-3)

    # --- check 2: CE kernel vs plain-JAX reference on the same logits ---
    lg = jnp.transpose(logits, (0, 2, 3, 1)).reshape(-1, num_classes)
    tg = seg_gt.reshape(-1)
    valid = tg != IGNORE_INDEX
    lse = jax.nn.logsumexp(lg, axis=-1)
    tgt_logit = jnp.take_along_axis(
        lg, jnp.clip(tg, 0, num_classes - 1)[:, None], axis=-1)[:, 0]
    ref = jnp.sum((lse - tgt_logit) * valid) / jnp.sum(valid)
    assert jnp.allclose(loss, ref, rtol=1e-4, atol=1e-4), (loss, ref)
    assert logits.shape == (B, num_classes, H, W)

    print("KERNEL_OK")
</pallas_src>

<mosaic_0001>
module attributes {stable_mosaic.version = 11 : i64} {
  func.func @_fused_fwd_kernel(%arg0: i32, %arg1: memref<48x32xbf16, #tpu.memory_space<vmem>>, %arg2: memref<32x48xbf16, #tpu.memory_space<vmem>>, %arg3: memref<32x1xf32, #tpu.memory_space<vmem>>, %arg4: memref<32x32xbf16, #tpu.memory_space<vmem>>, %arg5: memref<32x1xf32, #tpu.memory_space<vmem>>, %arg6: memref<8x32xbf16, #tpu.memory_space<vmem>>, %arg7: memref<8x1xf32, #tpu.memory_space<vmem>>, %arg8: memref<8x32xf32, #tpu.memory_space<vmem>>) attributes {dimension_semantics = [#tpu.dimension_semantics<parallel>], iteration_bounds = array<i64: 1>, scalar_prefetch = 0 : i64, scratch_operands = 0 : i64, tpu.core_type = #tpu.core_type<tc>, window_params = [{transform_indices = @transform_0, window_bounds = array<i64: 48, 32>}, {pipeline_mode = #tpu.pipeline_mode<synchronous>, transform_indices = @transform_1, window_bounds = array<i64: 32, 48>}, {pipeline_mode = #tpu.pipeline_mode<synchronous>, transform_indices = @transform_2, window_bounds = array<i64: 32, 1>}, {pipeline_mode = #tpu.pipeline_mode<synchronous>, transform_indices = @transform_3, window_bounds = array<i64: 32, 32>}, {pipeline_mode = #tpu.pipeline_mode<synchronous>, transform_indices = @transform_4, window_bounds = array<i64: 32, 1>}, {pipeline_mode = #tpu.pipeline_mode<synchronous>, transform_indices = @transform_5, window_bounds = array<i64: 8, 32>}, {pipeline_mode = #tpu.pipeline_mode<synchronous>, transform_indices = @transform_6, window_bounds = array<i64: 8, 1>}, {transform_indices = @transform_7, window_bounds = array<i64: 8, 32>}]} {
    %c0 = arith.constant 0 : index
    %c0_0 = arith.constant 0 : index
    %0 = vector.load %arg2[%c0, %c0_0] : memref<32x48xbf16, #tpu.memory_space<vmem>>, vector<32x48xbf16>
    %c0_1 = arith.constant 0 : index
    %c0_2 = arith.constant 0 : index
    %1 = vector.load %arg1[%c0_1, %c0_2] : memref<48x32xbf16, #tpu.memory_space<vmem>>, vector<48x32xbf16>
    %cst = arith.constant dense<0.000000e+00> : vector<32x32xf32>
    %2 = tpu.matmul %0, %1, %cst {dimension_numbers = #tpu.dot_dimension_numbers<[1], [0], [0], [1], [0, 0, 1, 1], [], []>} : vector<32x48xbf16>, vector<48x32xbf16>, vector<32x32xf32> -> vector<32x32xf32>
    %c0_3 = arith.constant 0 : index
    %c0_4 = arith.constant 0 : index
    %3 = vector.load %arg3[%c0_3, %c0_4] : memref<32x1xf32, #tpu.memory_space<vmem>>, vector<32x1xf32>
    %4 = vector.broadcast %3 : vector<32x1xf32> to vector<32x32xf32>
    %5 = arith.addf %2, %4 : vector<32x32xf32>
    %c0_5 = arith.constant 0 : index
    %c0_6 = arith.constant 0 : index
    %6 = vector.load %arg4[%c0_5, %c0_6] : memref<32x32xbf16, #tpu.memory_space<vmem>>, vector<32x32xbf16>
    %7 = arith.truncf %5 : vector<32x32xf32> to vector<32x32xbf16>
    %cst_7 = arith.constant dense<0.000000e+00> : vector<32x32xf32>
    %8 = tpu.matmul %6, %7, %cst_7 {dimension_numbers = #tpu.dot_dimension_numbers<[1], [0], [0], [1], [0, 0, 1, 1], [], []>} : vector<32x32xbf16>, vector<32x32xbf16>, vector<32x32xf32> -> vector<32x32xf32>
    %c0_8 = arith.constant 0 : index
    %c0_9 = arith.constant 0 : index
    %9 = vector.load %arg5[%c0_8, %c0_9] : memref<32x1xf32, #tpu.memory_space<vmem>>, vector<32x1xf32>
    %10 = vector.broadcast %9 : vector<32x1xf32> to vector<32x32xf32>
    %11 = arith.addf %8, %10 : vector<32x32xf32>
    %c0_10 = arith.constant 0 : index
    %c0_11 = arith.constant 0 : index
    %12 = vector.load %arg6[%c0_10, %c0_11] : memref<8x32xbf16, #tpu.memory_space<vmem>>, vector<8x32xbf16>
    %13 = arith.truncf %11 : vector<32x32xf32> to vector<32x32xbf16>
    %cst_12 = arith.constant dense<0.000000e+00> : vector<8x32xf32>
    %14 = tpu.matmul %12, %13, %cst_12 {dimension_numbers = #tpu.dot_dimension_numbers<[1], [0], [0], [1], [0, 0, 1, 1], [], []>} : vector<8x32xbf16>, vector<32x32xbf16>, vector<8x32xf32> -> vector<8x32xf32>
    %c0_13 = arith.constant 0 : index
    %c0_14 = arith.constant 0 : index
    %15 = vector.load %arg7[%c0_13, %c0_14] : memref<8x1xf32, #tpu.memory_space<vmem>>, vector<8x1xf32>
    %16 = vector.broadcast %15 : vector<8x1xf32> to vector<8x32xf32>
    %17 = arith.addf %14, %16 : vector<8x32xf32>
    %c0_15 = arith.constant 0 : index
    %c0_16 = arith.constant 0 : index
    %18 = vector.load %arg8[%c0_15, %c0_16] : memref<8x32xf32, #tpu.memory_space<vmem>>, vector<8x32xf32>
    tpu.vector_store %arg8[%c0_15, %c0_16], %17 {strides = array<i32>} : memref<8x32xf32, #tpu.memory_space<vmem>>, vector<8x32xf32>,
    return
  }
  func.func @transform_0(%arg0: i32) -> (i32, i32) {
    %c0_i32 = arith.constant 0 : i32
    %c0_i32_0 = arith.constant 0 : i32
    return %c0_i32, %arg0 : i32, i32
  }
  func.func @transform_1(%arg0: i32) -> (i32, i32) {
    %c0_i32 = arith.constant 0 : i32
    %c0_i32_0 = arith.constant 0 : i32
    %c0_i32_1 = arith.constant 0 : i32
    return %c0_i32, %c0_i32_0 : i32, i32
  }
  func.func @transform_2(%arg0: i32) -> (i32, i32) {
    %c0_i32 = arith.constant 0 : i32
    %c0_i32_0 = arith.constant 0 : i32
    %c0_i32_1 = arith.constant 0 : i32
    return %c0_i32, %c0_i32_0 : i32, i32
  }
  func.func @transform_3(%arg0: i32) -> (i32, i32) {
    %c0_i32 = arith.constant 0 : i32
    %c0_i32_0 = arith.constant 0 : i32
    %c0_i32_1 = arith.constant 0 : i32
    return %c0_i32, %c0_i32_0 : i32, i32
  }
  func.func @transform_4(%arg0: i32) -> (i32, i32) {
    %c0_i32 = arith.constant 0 : i32
    %c0_i32_0 = arith.constant 0 : i32
    %c0_i32_1 = arith.constant 0 : i32
    return %c0_i32, %c0_i32_0 : i32, i32
  }
  func.func @transform_5(%arg0: i32) -> (i32, i32) {
    %c0_i32 = arith.constant 0 : i32
    %c0_i32_0 = arith.constant 0 : i32
    %c0_i32_1 = arith.constant 0 : i32
    return %c0_i32, %c0_i32_0 : i32, i32
  }
  func.func @transform_6(%arg0: i32) -> (i32, i32) {
    %c0_i32 = arith.constant 0 : i32
    %c0_i32_0 = arith.constant 0 : i32
    %c0_i32_1 = arith.constant 0 : i32
    return %c0_i32, %c0_i32_0 : i32, i32
  }
  func.func @transform_7(%arg0: i32) -> (i32, i32) {
    %c0_i32 = arith.constant 0 : i32
    %c0_i32_0 = arith.constant 0 : i32
    return %c0_i32, %arg0 : i32, i32
  }
}

</mosaic_0001>

<bundles_post_ra>
// kernel: tpu_custom_call.1
= control target key start
LH: loop header
LB: loop body
LE: loop exit
PB: predicated region body
PF: predicated region fallthrough
CT: control target
= control target key end

     0   :  { %v298_v1 = vmov 0   ;;  %s398_s0 = inlined_call_operand.vmem [shape: bf16[48,32], index: 0, kind: input, shape index: {}]   ;;  %s399_s1 = inlined_call_operand.vmem [shape: bf16[32,48], index: 1, kind: input, shape index: {}]   ;;  %s400_s2 = inlined_call_operand.vmem [shape: f32[32,1], index: 2, kind: input, shape index: {}]   ;;  %s401_s3 = inlined_call_operand.vmem [shape: bf16[32,32], index: 3, kind: input, shape index: {}]   ;;  %s402_s4 = inlined_call_operand.vmem [shape: f32[32,1], index: 4, kind: input, shape index: {}]   ;;  %s403_s5 = inlined_call_operand.vmem [shape: bf16[8,32], index: 5, kind: input, shape index: {}]   ;;  %s404_s6 = inlined_call_operand.vmem [shape: f32[8,1], index: 6, kind: input, shape index: {}]   ;;  %s405_s7 = inlined_call_operand.hbm [shape: f32[8,32], index: 7, kind: output, shape index: {}]  }
   0x1   :  { %v261_v0 = vld [vmem:[%s398_s0 + $0x10] sm:$0xff]  ;;  %269 = vset.pattern.permute.xlu0 %v298_v1  ;;  %270 = vset.pattern.permute.xlu1 %v298_v1  ;;  %v260_v3 = vld [vmem:[%s398_s0 + $0x8] sm:$0xff]  ;;  %v38_v4 = vld [vmem:[%s400_s2] sm:$0xff] }
   0x2   :  { %v40_v2 = vld [vmem:[%s400_s2 + $0x10] sm:$0xff]  ;;  %264 = vmatpush.bf16.msra.mxu3 %v261_v0  ;;  %102 = vmatpush.bf16.msra.mxu0 %v261_v0 }
   0x3   :  { %54 = vperm.xlu0 %269, %v40_v2   ;;  %44 = vperm.xlu1 %270, %v38_v4  }
   0x4   :  { %12 = vsyncpa [#allocation3], 0  ;;  %271 = vset.pattern.permute.xlu2 %v298_v1  ;;  %v259_v5 = vld [vmem:[%s398_s0] sm:$0xff]  ;;  %v41_v6 = vld [vmem:[%s400_s2 + $0x18] sm:$0xff]  ;;  %vm90_vm0 = vcmask 392192   ;;  %vm156_vm1 = vcmask 261120  }
   0x5   :  { %v39_v7 = vld [vmem:[%s400_s2 + $0x8] sm:$0xff]  ;;  %v257_v9 = vld [vmem:[%s399_s1] sm:$0xff]  ;;  %v124_v16 = vld [vmem:[%s402_s4 + $0x10] sm:$0xff]  ;;  %s299_s29 = smov [#allocation2]   ;;  %s215_s10 = sshll.u32 %s405_s7, 4  ;;  %s216_s10 = int_to_ptr.hbm [resolvable:$true] %s215_s10 }
   0x6   :  { %265 = vmatpush.bf16.msra.mxu3 %v260_v3  ;;  %103 = vmatpush.bf16.msra.mxu0 %v260_v3  ;;  %v258_v8 = vld [vmem:[%s399_s1 + $0x8] sm:$0xff]  ;;  %v122_v10 = vld [vmem:[%s402_s4] sm:$0xff]  ;;  %v125_v23 = vld [vmem:[%s402_s4 + $0x18] sm:$0xff]  ;;  %s213_s30 = sshll.u32 %s299_s29, 4  ;;  %s214_s30 = int_to_ptr.vmem [resolvable:$true] %s213_s30 }
   0x7   :  { %v123_v11 = vld [vmem:[%s402_s4 + $0x8] sm:$0xff]  ;;  %138 = vperm.xlu2 %271, %v124_v16   ;;  %v262_v28 = vld [vmem:[%s401_s3] sm:$0xff] }
   0x8   :  { %v185_v29 = vld [vmem:[%s404_s6] sm:$0xff]  ;;  %v263_v30 = vld [vmem:[%s401_s3 + $0x8] sm:$0xff] }
   0x9   :  { %v182_v45 = vld [vmem:[%s403_s5] sm:$0xf] }
   0xa   :  { %266 = vmatpush.bf16.msra.mxu3 %v259_v5  ;;  %104 = vmatpush.bf16.msra.mxu0 %v259_v5 }
   0xb   :  { %59 = vperm.xlu0 %269, %v41_v6   ;;  %49 = vperm.xlu1 %270, %v39_v7  }
   0xd   :  { %245 = vmatmul.msk.bf16.vlgmr.msra.gmra.mxu3 %vm90_vm0, %v258_v8  ;;  %244 = vmatmul.msk.bf16.vlgmr.msra.gmra.mxu0 %vm90_vm0, %v257_v9 }
   0xf   :  { %143 = vperm.xlu2 %271, %v125_v23  }
  0x13   :  { %128 = vperm.xlu0 %269, %v122_v10   ;;  %133 = vperm.xlu1 %270, %v123_v11  }
  0x17   :  { %188 = vperm.xlu2 %271, %v185_v29  }
  0x61   :  { %v139_v33 = vpop.permute.xlu2 %138 }
  0x69   :  { %v144_v35 = vpop.permute.xlu2 %143 }
  0x71   :  { %v189_v46 = vpop.permute.xlu2 %188 }
  0x75   :  { %v55_v12 = vpop.permute.xlu0 %54  ;;  %v45_v14 = vpop.permute.xlu1 %44 }
  0x7d   :  { %v60_v17 = vpop.permute.xlu0 %59  ;;  %v50_v22 = vpop.permute.xlu1 %49 }
  0x85   :  { %v134_v39 = vpop.permute.xlu1 %133  ;;  %v129_v42 = vpop.permute.xlu0 %128 }
  0x8a   :  { %v106_v13 = vpop.f32.mrf.mxu0 }
  0x8b   :  { %v107_v24 = vadd.f32 %v106_v13, %v45_v14 }
  0x90   :  { %v111_v15 = vpop.f32.mrf.mxu3 }
  0x91   :  { %v112_v20 = vadd.f32 %v111_v15, %v55_v12 }
  0x92   :  { %v108_v18 = vpop.f32.mrf.mxu0 }
  0x93   :  { %v109_v25 = vadd.f32 %v108_v18, %v50_v22 }
  0x95   :  { %v120_v27 = vpack.c.bf16 %v109_v25, %v107_v24 }
  0x98   :  { %v113_v19 = vpop.f32.mrf.mxu3 }
  0x99   :  { %v114_v21 = vadd.f32 %v113_v19, %v60_v17 }
  0x9b   :  { %v121_v26 = vpack.c.bf16 %v114_v21, %v112_v20 }
  0x9d   :  { %169 = vmatpush.bf16.msra.mxu1 %v121_v26 }
  0xa1   :  { %170 = vmatpush.bf16.msra.mxu1 %v120_v27 }
  0xa4   :  { %254 = vmatmul.msk.bf16.vlgmr.msra.gmra.mxu1 %vm156_vm1, %v262_v28 }
  0xb4   :  { %255 = vmatmul.msk.bf16.gmra.mxu1 %vm156_vm1, %v263_v30 }
 0x121   :  { %v172_v31 = vpop.f32.mrf.mxu1 }
 0x122   :  { %v173_v43 = vadd.f32 %v172_v31, %v129_v42 }
 0x129   :  { %v174_v32 = vpop.f32.mrf.mxu1 }
 0x12a   :  { %v175_v40 = vadd.f32 %v174_v32, %v134_v39 }
 0x12c   :  { %v183_v44 = vpack.c.bf16 %v175_v40, %v173_v43 }
 0x131   :  { %v177_v34 = vpop.f32.mrf.mxu1 }
 0x132   :  { %v178_v37 = vadd.f32 %v177_v34, %v139_v33 }
 0x139   :  { %v179_v36 = vpop.f32.mrf.mxu1 }
 0x13a   :  { %v180_v38 = vadd.f32 %v179_v36, %v144_v35 }
 0x13c   :  { %v184_v41 = vpack.c.bf16 %v180_v38, %v178_v37 }
 0x13e   :  { %200 = vmatpush.bf16.msra.mxu2 %v184_v41 }
 0x142   :  { %201 = vmatpush.bf16.msra.mxu2 %v183_v44 }
 0x145   :  { %256 = vmatmul.msk.bf16.vlgmr.msra.gmra.mxu2 %vm156_vm1, %v182_v45 }
 0x1c8   :  { %v203_v47 = vpop.f32.mrf.mxu2 }
 0x1c9   :  { %v204_v48 = vadd.f32 %v203_v47, %v189_v46 }
 0x1cb   :  { %207 = vst.msk [vmem:[#allocation2] sm:$0xff] %vm156_vm1, %v204_v48 }
 0x1cc   :  { %218 = dma.vmem_to_hbm [thread:$0]  %s214_s30, 128, %s216_s10, [#allocation3]  }
 0x1d0   :  { %v205_v49 = vpop.f32.mrf.mxu2 }
 0x1d1   :  { %296 = dma.done.wait [#allocation3], 128  }
 0x1d2   :  { %297 = vsyncadd [#allocation3], 4294967168 }
 0x1d3   :  { %223 = vsyncpa [#allocation3], 1 }

</bundles_post_ra>
